<compile_context>
chip_gen: v7x
topology: tpu7x:2x2x1
jax: 0.10.0
libtpu: 0.0.40
codegen_flags: <defaults>
</compile_context>

<pallas_src>
import functools
import math

import jax
import jax.numpy as jnp
from jax.experimental import pallas as pl
from jax.experimental.pallas import tpu as pltpu

LN_EPS = 1e-5
_LANE = 128
_SUBLANE = 8


def _round_up(x, m):
    return (x + m - 1) // m * m


# --------------------------------------------------------------------------
# Generation-aware VMEM budgeting (v5e/v6e: 128 MiB, v7x: 64 MiB per core)
# --------------------------------------------------------------------------
def _vmem_capacity_bytes():
    try:
        return int(pltpu.get_tpu_info().vmem_capacity_bytes)
    except Exception:
        return 128 * 1024 * 1024  # conservative default (v5e/v6e)


_VMEM_CAP = _vmem_capacity_bytes()
_IS_SMALL_VMEM = _VMEM_CAP <= 80 * 1024 * 1024        # v7x-class TensorCore
_VMEM_LIMIT = min((_VMEM_CAP * 3) // 4, 112 * 1024 * 1024)
_NUM_TC = 2 if _IS_SMALL_VMEM else 1                  # v7x has 2 TCs/chip
_DEFAULT_TILE_ROWS = 512

_COMPILER_PARAMS = pltpu.CompilerParams(
    dimension_semantics=("parallel",),
    vmem_limit_bytes=_VMEM_LIMIT,
)


# --------------------------------------------------------------------------
# Kernel bodies
# --------------------------------------------------------------------------
def _mlp_tile(x, w1, vecs, w2, hidden):
    """Linear -> LayerNorm (over `hidden` valid lanes) -> ReLU -> Linear."""
    h_pad = w2.shape[-1]
    # LN / elementwise math stays f32 (v5e has no bf16 VALU/EUP).
    b1 = vecs[0:1, :].astype(jnp.float32)
    gamma = vecs[1:2, :].astype(jnp.float32)
    beta = vecs[2:3, :].astype(jnp.float32)
    b2 = vecs[3:4, :].astype(jnp.float32)

    # Linear 1 on the MXU: both operands in the weight dtype (bf16 weights ->
    # native MXU rate), f32 accumulation.  Padded lanes of h are exactly zero
    # (padded w1 columns and b1 entries are zero).
    h = jnp.dot(x.astype(w1.dtype), w1,
                preferred_element_type=jnp.float32) + b1

    # LayerNorm over the true hidden width (biased variance, PyTorch default).
    # Analytic pad correction instead of an iota/where mask: padded lanes of
    # `centered` are exactly (-mean), contributing (h_pad-hidden)*mean^2 to
    # the raw sum of squares.
    inv_n = 1.0 / hidden
    mean = jnp.sum(h, axis=-1, keepdims=True) * inv_n
    centered = h - mean
    raw = jnp.sum(centered * centered, axis=-1, keepdims=True)
    n_pad = h_pad - hidden
    if n_pad:
        raw = raw - float(n_pad) * (mean * mean)
    var = jnp.maximum(raw * inv_n, 0.0)  # guard against cancellation
    ln = centered * jax.lax.rsqrt(var + LN_EPS) * gamma + beta

    act = jnp.maximum(ln, 0.0)

    # Linear 2 on the MXU.  Padded gamma/beta/w2/b2 entries are zero, so the
    # padded output lanes are exactly zero.
    out = jnp.dot(act.astype(w2.dtype), w2, preferred_element_type=jnp.float32)
    return out + b2


def _fused_kernel(t_x_ref, t_w1_ref, t_vecs_ref, t_w2_ref,
                  s_x_ref, s_w1_ref, s_vecs_ref, s_w2_ref,
                  t_o_ref, s_o_ref, *, hidden):
    t_o_ref[...] = _mlp_tile(t_x_ref[...], t_w1_ref[...], t_vecs_ref[...],
                             t_w2_ref[...], hidden).astype(t_o_ref.dtype)
    s_o_ref[...] = _mlp_tile(s_x_ref[...], s_w1_ref[...], s_vecs_ref[...],
                             s_w2_ref[...], hidden).astype(s_o_ref.dtype)


def _branch_kernel(x_ref, w1_ref, vecs_ref, w2_ref, o_ref, *, hidden):
    o_ref[...] = _mlp_tile(x_ref[...], w1_ref[...], vecs_ref[...],
                           w2_ref[...], hidden).astype(o_ref.dtype)


# --------------------------------------------------------------------------
# Specs / tiling helpers
# --------------------------------------------------------------------------
def _resident_spec(shape):
    # Constant index map: the block never changes across the grid, so single
    # buffer it (no duplicate VMEM copy, no redundant per-step DMA).
    return pl.BlockSpec(shape, lambda i: (0, 0), pipeline_mode=pl.Buffered(1))


def _branch_cost(n_rows, d_in, h_pad, x_itemsize, w_itemsize):
    flops = 2 * n_rows * h_pad * (d_in + h_pad) + 10 * n_rows * h_pad
    bytes_accessed = (x_itemsize * n_rows * d_in                 # x
                      + w_itemsize * (d_in * h_pad               # w1
                                      + 4 * h_pad                # b1/g/b/b2
                                      + h_pad * h_pad)           # w2
                      + x_itemsize * n_rows * h_pad)             # out
    transcendentals = n_rows                                     # one rsqrt/row
    return flops, bytes_accessed, transcendentals


def _derive_tile_rows(n_rows, branch_dims, x_itemsize, w_itemsize, requested):
    """Largest multiple-of-8 row tile that fits the VMEM budget (and spreads
    work over both TensorCores on v7x-class parts)."""
    weight_bytes = sum((d * h + 4 * h + h * h) * w_itemsize
                       for d, h in branch_dims)
    per_row = 0
    for d, h in branch_dims:
        lane_in = _round_up(d, _LANE)
        per_row += 2 * lane_in * x_itemsize   # double-buffered input rows
        per_row += 2 * h * x_itemsize         # double-buffered output rows
        per_row += 4 * h * 4                  # f32 h / centered / ln / out
    budget = int(_VMEM_LIMIT * 0.85) - weight_bytes
    if budget <= 0:
        tm_cap = _SUBLANE
    else:
        tm_cap = max(_SUBLANE,
                     (budget // max(per_row, 1)) // _SUBLANE * _SUBLANE)

    tm = max(_SUBLANE, min(requested, tm_cap, _round_up(n_rows, _SUBLANE)))
    if _NUM_TC > 1:
        # Ensure >= _NUM_TC grid programs so "parallel" shards rows across
        # both TensorCores (v7x); no-op on single-TC chips.
        per_core = max(_SUBLANE, _round_up(pl.cdiv(n_rows, _NUM_TC), _SUBLANE))
        tm = min(tm, per_core)
    return tm


# --------------------------------------------------------------------------
# pallas_call wrappers
# --------------------------------------------------------------------------
def _fused_call(t2d, s2d, t_params, s_params, hidden_size, tile_rows):
    n, d_t = t2d.shape
    d_s = s2d.shape[1]
    t_w1, t_vecs, t_w2 = t_params["w1"], t_params["vecs"], t_params["w2"]
    s_w1, s_vecs, s_w2 = s_params["w1"], s_params["vecs"], s_params["w2"]
    t_hp = t_w2.shape[-1]
    s_hp = s_w2.shape[-1]

    x_isz = jnp.dtype(t2d.dtype).itemsize
    w_isz = jnp.dtype(t_w1.dtype).itemsize
    tm = _derive_tile_rows(n, [(d_t, t_hp), (d_s, s_hp)], x_isz, w_isz,
                           tile_rows)
    grid = (pl.cdiv(n, tm),)

    f_t, b_t, tr_t = _branch_cost(n, d_t, t_hp, x_isz, w_isz)
    f_s, b_s, tr_s = _branch_cost(n, d_s, s_hp, x_isz, w_isz)
    cost = pl.CostEstimate(flops=f_t + f_s,
                           transcendentals=tr_t + tr_s,
                           bytes_accessed=b_t + b_s)

    kernel = functools.partial(_fused_kernel, hidden=hidden_size)

    t_out, s_out = pl.pallas_call(
        kernel,
        out_shape=(jax.ShapeDtypeStruct((n, t_hp), t2d.dtype),
                   jax.ShapeDtypeStruct((n, s_hp), s2d.dtype)),
        grid_spec=pltpu.PrefetchScalarGridSpec(
            num_scalar_prefetch=0,
            grid=grid,
            in_specs=[
                pl.BlockSpec((tm, d_t), lambda i: (i, 0)),   # t rows (stream)
                _resident_spec((d_t, t_hp)),                 # t w1
                _resident_spec((4, t_hp)),                   # t b1/g/b/b2
                _resident_spec((t_hp, t_hp)),                # t w2
                pl.BlockSpec((tm, d_s), lambda i: (i, 0)),   # s rows (stream)
                _resident_spec((d_s, s_hp)),                 # s w1
                _resident_spec((4, s_hp)),                   # s b1/g/b/b2
                _resident_spec((s_hp, s_hp)),                # s w2
            ],
            out_specs=[
                pl.BlockSpec((tm, t_hp), lambda i: (i, 0)),
                pl.BlockSpec((tm, s_hp), lambda i: (i, 0)),
            ],
        ),
        compiler_params=_COMPILER_PARAMS,
        cost_estimate=cost,
    )(t2d, t_w1, t_vecs, t_w2, s2d, s_w1, s_vecs, s_w2)
    return t_out, s_out


def _branch_call(x2d, params, hidden_size, tile_rows):
    n, d_in = x2d.shape
    w1, vecs, w2 = params["w1"], params["vecs"], params["w2"]
    h_pad = w2.shape[-1]

    x_isz = jnp.dtype(x2d.dtype).itemsize
    w_isz = jnp.dtype(w1.dtype).itemsize
    tm = _derive_tile_rows(n, [(d_in, h_pad)], x_isz, w_isz, tile_rows)
    grid = (pl.cdiv(n, tm),)

    flops, bytes_accessed, trans = _branch_cost(n, d_in, h_pad, x_isz, w_isz)
    kernel = functools.partial(_branch_kernel, hidden=hidden_size)

    return pl.pallas_call(
        kernel,
        out_shape=jax.ShapeDtypeStruct((n, h_pad), x2d.dtype),
        grid_spec=pltpu.PrefetchScalarGridSpec(
            num_scalar_prefetch=0,
            grid=grid,
            in_specs=[
                pl.BlockSpec((tm, d_in), lambda i: (i, 0)),
                _resident_spec((d_in, h_pad)),
                _resident_spec((4, h_pad)),
                _resident_spec((h_pad, h_pad)),
            ],
            out_specs=pl.BlockSpec((tm, h_pad), lambda i: (i, 0)),
        ),
        compiler_params=_COMPILER_PARAMS,
        cost_estimate=pl.CostEstimate(flops=flops, transcendentals=trans,
                                      bytes_accessed=bytes_accessed),
    )(x2d, w1, vecs, w2)


def _flatten_rows(x):
    lead = x.shape[:-1]
    n = int(math.prod(lead)) if lead else 1
    return x.reshape(n, x.shape[-1]), lead, n


def ms_emb_forward(t_src, s_src, t_params, s_params, *,
                   hidden_size, tile_rows=_DEFAULT_TILE_ROWS,
                   trim_output=True):
    """Fused MS_Emb forward: returns (t_emb, s_emb)."""
    t2d, t_lead, t_n = _flatten_rows(t_src)
    s2d, s_lead, s_n = _flatten_rows(s_src)

    if t_n == s_n:
        t_out, s_out = _fused_call(t2d, s2d, t_params, s_params,
                                   hidden_size, tile_rows)
    else:
        # Leading shapes differ -> fall back to two launches.
        t_out = _branch_call(t2d, t_params, hidden_size, tile_rows)
        s_out = _branch_call(s2d, s_params, hidden_size, tile_rows)

    h_pad = t_out.shape[-1]
    if trim_output and h_pad != hidden_size:
        # Padded lanes are exactly zero; downstream consumers can set
        # trim_output=False to skip this HBM copy and consume the padded slab.
        t_out = t_out[:, :hidden_size]
        s_out = s_out[:, :hidden_size]
        out_h = hidden_size
    else:
        out_h = t_out.shape[-1]
    t_out = t_out.reshape(*t_lead, out_h)
    s_out = s_out.reshape(*s_lead, out_h)
    return t_out, s_out


# --------------------------------------------------------------------------
# Parameter init (PyTorch-style) with lane-dense padding of the hidden dim
# --------------------------------------------------------------------------
def _init_branch(key, d_in, hidden, dtype):
    h_pad = _round_up(hidden, _LANE)
    kw1, kb1, kw2, kb2 = jax.random.split(key, 4)
    bound1 = 1.0 / math.sqrt(d_in)
    bound2 = 1.0 / math.sqrt(hidden)
    w1 = jax.random.uniform(kw1, (d_in, hidden), jnp.float32, -bound1, bound1)
    b1 = jax.random.uniform(kb1, (hidden,), jnp.float32, -bound1, bound1)
    w2 = jax.random.uniform(kw2, (hidden, hidden), jnp.float32, -bound2, bound2)
    b2 = jax.random.uniform(kb2, (hidden,), jnp.float32, -bound2, bound2)
    gamma = jnp.ones((hidden,), jnp.float32)
    beta = jnp.zeros((hidden,), jnp.float32)

    w1p = jnp.zeros((d_in, h_pad), dtype).at[:, :hidden].set(w1.astype(dtype))
    w2p = jnp.zeros((h_pad, h_pad), dtype).at[:hidden, :hidden].set(
        w2.astype(dtype))
    vecs = jnp.zeros((4, h_pad), dtype)
    vecs = vecs.at[0, :hidden].set(b1.astype(dtype))
    vecs = vecs.at[1, :hidden].set(gamma.astype(dtype))
    vecs = vecs.at[2, :hidden].set(beta.astype(dtype))
    vecs = vecs.at[3, :hidden].set(b2.astype(dtype))
    return {"w1": w1p, "vecs": vecs, "w2": w2p}


def init_ms_emb_params(key, t_input_size, s_input_size, hidden_size,
                       dtype=jnp.float32):
    # dtype=jnp.bfloat16 gives native-rate MXU matmuls and halves weight
    # VMEM/DMA; accumulation and LayerNorm math stay f32 inside the kernel.
    kt, ks = jax.random.split(key)
    t_params = _init_branch(kt, t_input_size, hidden_size, dtype)
    s_params = _init_branch(ks, s_input_size, hidden_size, dtype)
    return t_params, s_params


# --------------------------------------------------------------------------
# Pure-JAX reference for correctness checking
# --------------------------------------------------------------------------
def _reference_branch(x, params, hidden):
    w1 = params["w1"][:, :hidden].astype(jnp.float32)
    w2 = params["w2"][:hidden, :hidden].astype(jnp.float32)
    b1 = params["vecs"][0, :hidden].astype(jnp.float32)
    gamma = params["vecs"][1, :hidden].astype(jnp.float32)
    beta = params["vecs"][2, :hidden].astype(jnp.float32)
    b2 = params["vecs"][3, :hidden].astype(jnp.float32)
    h = x.astype(jnp.float32) @ w1 + b1
    mean = jnp.mean(h, axis=-1, keepdims=True)
    var = jnp.mean((h - mean) ** 2, axis=-1, keepdims=True)
    ln = (h - mean) * jax.lax.rsqrt(var + LN_EPS) * gamma + beta
    act = jnp.maximum(ln, 0.0)
    return act @ w2 + b2


if __name__ == "__main__":
    # Small shapes consistent with the module: (batch, seq, feature) inputs.
    batch, seq = 2, 8
    t_input_size, s_input_size, hidden_size = 12, 24, 32

    key = jax.random.PRNGKey(0)
    k_t, k_s, k_p = jax.random.split(key, 3)

    t_src = jax.random.normal(k_t, (batch, seq, t_input_size), jnp.float32)
    s_src = jax.random.normal(k_s, (batch, seq, s_input_size), jnp.float32)

    fwd = jax.jit(functools.partial(ms_emb_forward, hidden_size=hidden_size))

    # --- f32 weights: exact-ish match against the pure-JAX reference -------
    t_params, s_params = init_ms_emb_params(
        k_p, t_input_size, s_input_size, hidden_size, dtype=jnp.float32)
    t_out, s_out = fwd(t_src, s_src, t_params, s_params)
    jax.block_until_ready((t_out, s_out))

    t_ref = _reference_branch(t_src, t_params, hidden_size)
    s_ref = _reference_branch(s_src, s_params, hidden_size)
    assert t_out.shape == (batch, seq, hidden_size)
    assert s_out.shape == (batch, seq, hidden_size)
    assert jnp.allclose(t_out, t_ref, atol=1e-4, rtol=1e-4)
    assert jnp.allclose(s_out, s_ref, atol=1e-4, rtol=1e-4)

    # --- bf16 weights: native MXU rate, looser tolerance vs f32 reference --
    t_params_bf, s_params_bf = init_ms_emb_params(
        k_p, t_input_size, s_input_size, hidden_size, dtype=jnp.bfloat16)
    t_out_bf, s_out_bf = fwd(t_src, s_src, t_params_bf, s_params_bf)
    jax.block_until_ready((t_out_bf, s_out_bf))

    t_ref_bf = _reference_branch(t_src, t_params_bf, hidden_size)
    s_ref_bf = _reference_branch(s_src, s_params_bf, hidden_size)
    assert jnp.allclose(t_out_bf, t_ref_bf, atol=1e-1, rtol=1e-1)
    assert jnp.allclose(s_out_bf, s_ref_bf, atol=1e-1, rtol=1e-1)

    print("KERNEL_OK")
</pallas_src>

<mosaic_0001>
module attributes {stable_mosaic.version = 11 : i64} {
  func.func @_fused_kernel(%arg0: i32, %arg1: memref<16x12xf32, #tpu.memory_space<vmem>>, %arg2: memref<12x128xf32, #tpu.memory_space<vmem>>, %arg3: memref<4x128xf32, #tpu.memory_space<vmem>>, %arg4: memref<128x128xf32, #tpu.memory_space<vmem>>, %arg5: memref<16x24xf32, #tpu.memory_space<vmem>>, %arg6: memref<24x128xf32, #tpu.memory_space<vmem>>, %arg7: memref<4x128xf32, #tpu.memory_space<vmem>>, %arg8: memref<128x128xf32, #tpu.memory_space<vmem>>, %arg9: memref<16x128xf32, #tpu.memory_space<vmem>>, %arg10: memref<16x128xf32, #tpu.memory_space<vmem>>) attributes {dimension_semantics = [#tpu.dimension_semantics<parallel>], iteration_bounds = array<i64: 1>, scalar_prefetch = 0 : i64, scratch_operands = 0 : i64, tpu.core_type = #tpu.core_type<tc>, window_params = [{transform_indices = @transform_0, window_bounds = array<i64: 16, 12>}, {pipeline_mode = #tpu.pipeline_mode<synchronous>, transform_indices = @transform_1, window_bounds = array<i64: 12, 128>}, {pipeline_mode = #tpu.pipeline_mode<synchronous>, transform_indices = @transform_2, window_bounds = array<i64: 4, 128>}, {pipeline_mode = #tpu.pipeline_mode<synchronous>, transform_indices = @transform_3, window_bounds = array<i64: 128, 128>}, {transform_indices = @transform_4, window_bounds = array<i64: 16, 24>}, {pipeline_mode = #tpu.pipeline_mode<synchronous>, transform_indices = @transform_5, window_bounds = array<i64: 24, 128>}, {pipeline_mode = #tpu.pipeline_mode<synchronous>, transform_indices = @transform_6, window_bounds = array<i64: 4, 128>}, {pipeline_mode = #tpu.pipeline_mode<synchronous>, transform_indices = @transform_7, window_bounds = array<i64: 128, 128>}, {transform_indices = @transform_8, window_bounds = array<i64: 16, 128>}, {transform_indices = @transform_9, window_bounds = array<i64: 16, 128>}]} {
    %c0 = arith.constant 0 : index
    %c0_0 = arith.constant 0 : index
    %0 = vector.load %arg1[%c0, %c0_0] : memref<16x12xf32, #tpu.memory_space<vmem>>, vector<16x12xf32>
    %c0_1 = arith.constant 0 : index
    %c0_2 = arith.constant 0 : index
    %1 = vector.load %arg2[%c0_1, %c0_2] : memref<12x128xf32, #tpu.memory_space<vmem>>, vector<12x128xf32>
    %c0_3 = arith.constant 0 : index
    %c0_4 = arith.constant 0 : index
    %2 = vector.load %arg3[%c0_3, %c0_4] : memref<4x128xf32, #tpu.memory_space<vmem>>, vector<4x128xf32>
    %c0_5 = arith.constant 0 : index
    %c0_6 = arith.constant 0 : index
    %3 = vector.load %arg4[%c0_5, %c0_6] : memref<128x128xf32, #tpu.memory_space<vmem>>, vector<128x128xf32>
    %4 = vector.extract_strided_slice %2 {offsets = [0, 0], sizes = [1, 128], strides = [1, 1]} : vector<4x128xf32> to vector<1x128xf32>
    %5 = vector.extract_strided_slice %2 {offsets = [1, 0], sizes = [1, 128], strides = [1, 1]} : vector<4x128xf32> to vector<1x128xf32>
    %6 = vector.extract_strided_slice %2 {offsets = [2, 0], sizes = [1, 128], strides = [1, 1]} : vector<4x128xf32> to vector<1x128xf32>
    %7 = vector.extract_strided_slice %2 {offsets = [3, 0], sizes = [1, 128], strides = [1, 1]} : vector<4x128xf32> to vector<1x128xf32>
    %cst = arith.constant dense<0.000000e+00> : vector<16x128xf32>
    %8 = tpu.matmul %0, %1, %cst {dimension_numbers = #tpu.dot_dimension_numbers<[1], [0], [0], [1], [0, 0, 1, 1], [], []>} : vector<16x12xf32>, vector<12x128xf32>, vector<16x128xf32> -> vector<16x128xf32>
    %9 = vector.broadcast %4 : vector<1x128xf32> to vector<16x128xf32>
    %10 = arith.addf %8, %9 : vector<16x128xf32>
    %cst_7 = arith.constant dense<0.000000e+00> : vector<16xf32>
    %11 = vector.multi_reduction <add>, %10, %cst_7 [1] : vector<16x128xf32> to vector<16xf32>
    %12 = vector.shape_cast %11 : vector<16xf32> to vector<16x1xf32>
    %cst_8 = arith.constant 3.125000e-02 : f32
    %13 = vector.broadcast %cst_8 : f32 to vector<16x1xf32>
    %14 = arith.mulf %12, %13 : vector<16x1xf32>
    %15 = vector.broadcast %14 : vector<16x1xf32> to vector<16x128xf32>
    %16 = arith.subf %10, %15 : vector<16x128xf32>
    %17 = arith.mulf %16, %16 : vector<16x128xf32>
    %cst_9 = arith.constant dense<0.000000e+00> : vector<16xf32>
    %18 = vector.multi_reduction <add>, %17, %cst_9 [1] : vector<16x128xf32> to vector<16xf32>
    %19 = vector.shape_cast %18 : vector<16xf32> to vector<16x1xf32>
    %20 = arith.mulf %14, %14 : vector<16x1xf32>
    %cst_10 = arith.constant 9.600000e+01 : f32
    %21 = vector.broadcast %cst_10 : f32 to vector<16x1xf32>
    %22 = arith.mulf %21, %20 : vector<16x1xf32>
    %23 = arith.subf %19, %22 : vector<16x1xf32>
    %cst_11 = arith.constant 3.125000e-02 : f32
    %24 = vector.broadcast %cst_11 : f32 to vector<16x1xf32>
    %25 = arith.mulf %23, %24 : vector<16x1xf32>
    %cst_12 = arith.constant 0.000000e+00 : f32
    %26 = vector.broadcast %cst_12 : f32 to vector<16x1xf32>
    %27 = arith.maximumf %25, %26 : vector<16x1xf32>
    %cst_13 = arith.constant 9.99999974E-6 : f32
    %28 = vector.broadcast %cst_13 : f32 to vector<16x1xf32>
    %29 = arith.addf %27, %28 : vector<16x1xf32>
    %30 = math.rsqrt %29 : vector<16x1xf32>
    %31 = vector.broadcast %30 : vector<16x1xf32> to vector<16x128xf32>
    %32 = arith.mulf %16, %31 : vector<16x128xf32>
    %33 = vector.broadcast %5 : vector<1x128xf32> to vector<16x128xf32>
    %34 = arith.mulf %32, %33 : vector<16x128xf32>
    %35 = vector.broadcast %6 : vector<1x128xf32> to vector<16x128xf32>
    %36 = arith.addf %34, %35 : vector<16x128xf32>
    %cst_14 = arith.constant 0.000000e+00 : f32
    %37 = vector.broadcast %cst_14 : f32 to vector<16x128xf32>
    %38 = arith.maximumf %36, %37 : vector<16x128xf32>
    %cst_15 = arith.constant dense<0.000000e+00> : vector<16x128xf32>
    %39 = tpu.matmul %38, %3, %cst_15 {dimension_numbers = #tpu.dot_dimension_numbers<[1], [0], [0], [1], [0, 0, 1, 1], [], []>} : vector<16x128xf32>, vector<128x128xf32>, vector<16x128xf32> -> vector<16x128xf32>
    %40 = vector.broadcast %7 : vector<1x128xf32> to vector<16x128xf32>
    %41 = arith.addf %39, %40 : vector<16x128xf32>
    %c0_16 = arith.constant 0 : index
    %c0_17 = arith.constant 0 : index
    %42 = vector.load %arg9[%c0_16, %c0_17] : memref<16x128xf32, #tpu.memory_space<vmem>>, vector<16x128xf32>
    tpu.vector_store %arg9[%c0_16, %c0_17], %41 {strides = array<i32>} : memref<16x128xf32, #tpu.memory_space<vmem>>, vector<16x128xf32>,
    %c0_18 = arith.constant 0 : index
    %c0_19 = arith.constant 0 : index
    %43 = vector.load %arg5[%c0_18, %c0_19] : memref<16x24xf32, #tpu.memory_space<vmem>>, vector<16x24xf32>
    %c0_20 = arith.constant 0 : index
    %c0_21 = arith.constant 0 : index
    %44 = vector.load %arg6[%c0_20, %c0_21] : memref<24x128xf32, #tpu.memory_space<vmem>>, vector<24x128xf32>
    %c0_22 = arith.constant 0 : index
    %c0_23 = arith.constant 0 : index
    %45 = vector.load %arg7[%c0_22, %c0_23] : memref<4x128xf32, #tpu.memory_space<vmem>>, vector<4x128xf32>
    %c0_24 = arith.constant 0 : index
    %c0_25 = arith.constant 0 : index
    %46 = vector.load %arg8[%c0_24, %c0_25] : memref<128x128xf32, #tpu.memory_space<vmem>>, vector<128x128xf32>
    %47 = vector.extract_strided_slice %45 {offsets = [0, 0], sizes = [1, 128], strides = [1, 1]} : vector<4x128xf32> to vector<1x128xf32>
    %48 = vector.extract_strided_slice %45 {offsets = [1, 0], sizes = [1, 128], strides = [1, 1]} : vector<4x128xf32> to vector<1x128xf32>
    %49 = vector.extract_strided_slice %45 {offsets = [2, 0], sizes = [1, 128], strides = [1, 1]} : vector<4x128xf32> to vector<1x128xf32>
    %50 = vector.extract_strided_slice %45 {offsets = [3, 0], sizes = [1, 128], strides = [1, 1]} : vector<4x128xf32> to vector<1x128xf32>
    %cst_26 = arith.constant dense<0.000000e+00> : vector<16x128xf32>
    %51 = tpu.matmul %43, %44, %cst_26 {dimension_numbers = #tpu.dot_dimension_numbers<[1], [0], [0], [1], [0, 0, 1, 1], [], []>} : vector<16x24xf32>, vector<24x128xf32>, vector<16x128xf32> -> vector<16x128xf32>
    %52 = vector.broadcast %47 : vector<1x128xf32> to vector<16x128xf32>
    %53 = arith.addf %51, %52 : vector<16x128xf32>
    %cst_27 = arith.constant dense<0.000000e+00> : vector<16xf32>
    %54 = vector.multi_reduction <add>, %53, %cst_27 [1] : vector<16x128xf32> to vector<16xf32>
    %55 = vector.shape_cast %54 : vector<16xf32> to vector<16x1xf32>
    %cst_28 = arith.constant 3.125000e-02 : f32
    %56 = vector.broadcast %cst_28 : f32 to vector<16x1xf32>
    %57 = arith.mulf %55, %56 : vector<16x1xf32>
    %58 = vector.broadcast %57 : vector<16x1xf32> to vector<16x128xf32>
    %59 = arith.subf %53, %58 : vector<16x128xf32>
    %60 = arith.mulf %59, %59 : vector<16x128xf32>
    %cst_29 = arith.constant dense<0.000000e+00> : vector<16xf32>
    %61 = vector.multi_reduction <add>, %60, %cst_29 [1] : vector<16x128xf32> to vector<16xf32>
    %62 = vector.shape_cast %61 : vector<16xf32> to vector<16x1xf32>
    %63 = arith.mulf %57, %57 : vector<16x1xf32>
    %cst_30 = arith.constant 9.600000e+01 : f32
    %64 = vector.broadcast %cst_30 : f32 to vector<16x1xf32>
    %65 = arith.mulf %64, %63 : vector<16x1xf32>
    %66 = arith.subf %62, %65 : vector<16x1xf32>
    %cst_31 = arith.constant 3.125000e-02 : f32
    %67 = vector.broadcast %cst_31 : f32 to vector<16x1xf32>
    %68 = arith.mulf %66, %67 : vector<16x1xf32>
    %cst_32 = arith.constant 0.000000e+00 : f32
    %69 = vector.broadcast %cst_32 : f32 to vector<16x1xf32>
    %70 = arith.maximumf %68, %69 : vector<16x1xf32>
    %cst_33 = arith.constant 9.99999974E-6 : f32
    %71 = vector.broadcast %cst_33 : f32 to vector<16x1xf32>
    %72 = arith.addf %70, %71 : vector<16x1xf32>
    %73 = math.rsqrt %72 : vector<16x1xf32>
    %74 = vector.broadcast %73 : vector<16x1xf32> to vector<16x128xf32>
    %75 = arith.mulf %59, %74 : vector<16x128xf32>
    %76 = vector.broadcast %48 : vector<1x128xf32> to vector<16x128xf32>
    %77 = arith.mulf %75, %76 : vector<16x128xf32>
    %78 = vector.broadcast %49 : vector<1x128xf32> to vector<16x128xf32>
    %79 = arith.addf %77, %78 : vector<16x128xf32>
    %cst_34 = arith.constant 0.000000e+00 : f32
    %80 = vector.broadcast %cst_34 : f32 to vector<16x128xf32>
    %81 = arith.maximumf %79, %80 : vector<16x128xf32>
    %cst_35 = arith.constant dense<0.000000e+00> : vector<16x128xf32>
    %82 = tpu.matmul %81, %46, %cst_35 {dimension_numbers = #tpu.dot_dimension_numbers<[1], [0], [0], [1], [0, 0, 1, 1], [], []>} : vector<16x128xf32>, vector<128x128xf32>, vector<16x128xf32> -> vector<16x128xf32>
    %83 = vector.broadcast %50 : vector<1x128xf32> to vector<16x128xf32>
    %84 = arith.addf %82, %83 : vector<16x128xf32>
    %c0_36 = arith.constant 0 : index
    %c0_37 = arith.constant 0 : index
    %85 = vector.load %arg10[%c0_36, %c0_37] : memref<16x128xf32, #tpu.memory_space<vmem>>, vector<16x128xf32>
    tpu.vector_store %arg10[%c0_36, %c0_37], %84 {strides = array<i32>} : memref<16x128xf32, #tpu.memory_space<vmem>>, vector<16x128xf32>,
    return
  }
  func.func @transform_0(%arg0: i32) -> (i32, i32) {
    %c0_i32 = arith.constant 0 : i32
    %c0_i32_0 = arith.constant 0 : i32
    return %arg0, %c0_i32 : i32, i32
  }
  func.func @transform_1(%arg0: i32) -> (i32, i32) {
    %c0_i32 = arith.constant 0 : i32
    %c0_i32_0 = arith.constant 0 : i32
    %c0_i32_1 = arith.constant 0 : i32
    return %c0_i32, %c0_i32_0 : i32, i32
  }
  func.func @transform_2(%arg0: i32) -> (i32, i32) {
    %c0_i32 = arith.constant 0 : i32
    %c0_i32_0 = arith.constant 0 : i32
    %c0_i32_1 = arith.constant 0 : i32
    return %c0_i32, %c0_i32_0 : i32, i32
  }
  func.func @transform_3(%arg0: i32) -> (i32, i32) {
    %c0_i32 = arith.constant 0 : i32
    %c0_i32_0 = arith.constant 0 : i32
    %c0_i32_1 = arith.constant 0 : i32
    return %c0_i32, %c0_i32_0 : i32, i32
  }
  func.func @transform_4(%arg0: i32) -> (i32, i32) {
    %c0_i32 = arith.constant 0 : i32
    %c0_i32_0 = arith.constant 0 : i32
    return %arg0, %c0_i32 : i32, i32
  }
  func.func @transform_5(%arg0: i32) -> (i32, i32) {
    %c0_i32 = arith.constant 0 : i32
    %c0_i32_0 = arith.constant 0 : i32
    %c0_i32_1 = arith.constant 0 : i32
    return %c0_i32, %c0_i32_0 : i32, i32
  }
  func.func @transform_6(%arg0: i32) -> (i32, i32) {
    %c0_i32 = arith.constant 0 : i32
    %c0_i32_0 = arith.constant 0 : i32
    %c0_i32_1 = arith.constant 0 : i32
    return %c0_i32, %c0_i32_0 : i32, i32
  }
  func.func @transform_7(%arg0: i32) -> (i32, i32) {
    %c0_i32 = arith.constant 0 : i32
    %c0_i32_0 = arith.constant 0 : i32
    %c0_i32_1 = arith.constant 0 : i32
    return %c0_i32, %c0_i32_0 : i32, i32
  }
  func.func @transform_8(%arg0: i32) -> (i32, i32) {
    %c0_i32 = arith.constant 0 : i32
    %c0_i32_0 = arith.constant 0 : i32
    return %arg0, %c0_i32 : i32, i32
  }
  func.func @transform_9(%arg0: i32) -> (i32, i32) {
    %c0_i32 = arith.constant 0 : i32
    %c0_i32_0 = arith.constant 0 : i32
    return %arg0, %c0_i32 : i32, i32
  }
}

</mosaic_0001>

<bundles_post_ra>
// kernel: ms_emb_forward.1
= control target key start
LH: loop header
LB: loop body
LE: loop exit
PB: predicated region body
PF: predicated region fallthrough
CT: control target
= control target key end

     0   :  { %15 = vsyncpa [#allocation3], 0  ;;  %s1413_s0 = inlined_call_operand.hbm [shape: f32[16,12], index: 0, kind: input, shape index: {}]   ;;  %s1414_s1 = inlined_call_operand.hbm [shape: f32[12,128], index: 1, kind: input, shape index: {}]   ;;  %s1415_s2 = inlined_call_operand.hbm [shape: f32[4,128], index: 2, kind: input, shape index: {}]   ;;  %s1416_s3 = inlined_call_operand.hbm [shape: f32[128,128], index: 3, kind: input, shape index: {}]   ;;  %s1417_s4 = inlined_call_operand.hbm [shape: f32[16,24], index: 4, kind: input, shape index: {}]   ;;  %s1418_s5 = inlined_call_operand.hbm [shape: f32[24,128], index: 5, kind: input, shape index: {}]   ;;  %s1419_s6 = inlined_call_operand.hbm [shape: f32[4,128], index: 6, kind: input, shape index: {}]   ;;  %s1420_s7 = inlined_call_operand.hbm [shape: f32[128,128], index: 7, kind: input, shape index: {}]   ;;  %s1421_s8 = inlined_call_operand.hbm [shape: f32[16,128], index: 8, kind: output, shape index: {0}]   ;;  %s1422_s9 = inlined_call_operand.hbm [shape: f32[16,128], index: 9, kind: output, shape index: {1}]  }
   0x1   :  { %16 = vsyncpa [#allocation6], 0 }
   0x2   :  { %17 = vsyncpa [#allocation9], 0 }
   0x3   :  { %18 = vsyncpa [#allocation12], 0 }
   0x4   :  { %19 = vsyncpa [#allocation15], 0 }
   0x5   :  { %20 = vsyncpa [#allocation4], 0 }
   0x6   :  { %21 = vsyncpa [#allocation18], 0  ;;  %s1109_s30 = smov [#allocation5]   ;;  %s1110_s11 = smov [#allocation8]  }
   0x7   :  { %s39_s10 = sshll.u32 %s1109_s30, 4  ;;  %s61_s12 = sshll.u32 %s1110_s11, 4  ;;  %s40_s10 = int_to_ptr.vmem [resolvable:$true] %s39_s10  ;;  %s1172_s12 = int_to_ptr.vmem [resolvable:$true] %s61_s12 }
   0x8   :  { %s875_s15 = scalar_lea.hbm %s1414_s1, 256 }
   0x9   :  { %p876_p0 = scmp.ne.s32.totalorder %s1414_s1, %s875_s15  ;;  %p879_p1 = scmp.lt.u32.totalorder %s875_s15, %s1414_s1 }
   0xb   :  { %p881_p2 = pnand %p879_p1, %p876_p0 }
   0xd   :  { %884 = shalt.err (!%p881_p2)
}
   0xe   :  { %s885_s20 = scalar_lea.vmem %s40_s10, 256  ;;  %p890_p4 = scmp.lt.s32.totalorder %s40_s10, %s40_s10 }
   0xf   :  { %p886_p3 = scmp.ne.s32.totalorder %s40_s10, %s885_s20  ;;  %p891_p5 = scmp.lt.s32.totalorder %s885_s20, %s885_s20 }
  0x11   :  { %p892_p6 = por %p891_p5, %p890_p4 }
  0x13   :  { %p893_p7 = pnand %p892_p6, %p886_p3 }
  0x15   :  { %896 = shalt.err (!%p893_p7)
}
  0x16   :  { %s1111_s21 = smov 128   ;;  %s1112_s22 = smov 8  }
  0x17   :  { %45 = dma.hbm_to_vmem [thread:$0]  %s1414_s1, 256, %s40_s10, [#allocation6], %s1111_s21, %s1111_s21, %s1112_s22  }
  0x18   :  { %s897_s27 = scalar_lea.hbm %s1416_s3, 2048 }
  0x19   :  { %p898_p8 = scmp.ne.s32.totalorder %s1416_s3, %s897_s27  ;;  %p901_p9 = scmp.lt.u32.totalorder %s897_s27, %s1416_s3 }
  0x1b   :  { %p903_p10 = pnand %p901_p9, %p898_p8 }
  0x1d   :  { %906 = shalt.err (!%p903_p10)
}
  0x1e   :  { %s907_s13 = scalar_lea.vmem %s1172_s12, 2048  ;;  %p912_p12 = scmp.lt.s32.totalorder %s1172_s12, %s1172_s12 }
  0x1f   :  { %p908_p11 = scmp.ne.s32.totalorder %s1172_s12, %s907_s13  ;;  %p913_p13 = scmp.lt.s32.totalorder %s907_s13, %s907_s13 }
  0x21   :  { %p914_p0 = por %p913_p13, %p912_p12 }
  0x23   :  { %p915_p1 = pnand %p914_p0, %p908_p11 }
  0x25   :  { %918 = shalt.err (!%p915_p1)
}
  0x26   :  { %67 = dma.hbm_to_vmem [thread:$0]  %s1416_s3, 2048, %s1172_s12, [#allocation9], %s1111_s21, %s1111_s21, %s1112_s22  }
  0x27   :  { %s1113_s14 = smov [#allocation11]   ;;  %s1114_s16 = smov [#allocation2]  }
  0x28   :  { %s85_s15 = sshll.u32 %s1113_s14, 4  ;;  %s27_s17 = sshll.u32 %s1114_s16, 4  ;;  %s86_s15 = int_to_ptr.vmem [resolvable:$true] %s85_s15  ;;  %s1209_s17 = int_to_ptr.vmem [resolvable:$true] %s27_s17 }
  0x29   :  { %s919_s20 = scalar_lea.hbm %s1418_s5, 384 }
  0x2a   :  { %p920_p2 = scmp.ne.s32.totalorder %s1418_s5, %s919_s20  ;;  %p923_p3 = scmp.lt.u32.totalorder %s919_s20, %s1418_s5 }
  0x2c   :  { %p925_p4 = pnand %p923_p3, %p920_p2 }
  0x2e   :  { %928 = shalt.err (!%p925_p4)
}
  0x2f   :  { %s929_s3 = scalar_lea.vmem %s86_s15, 384  ;;  %p934_p6 = scmp.lt.s32.totalorder %s86_s15, %s86_s15 }
  0x30   :  { %p930_p5 = scmp.ne.s32.totalorder %s86_s15, %s929_s3  ;;  %p935_p7 = scmp.lt.s32.totalorder %s929_s3, %s929_s3 }
  0x32   :  { %p936_p8 = por %p935_p7, %p934_p6 }
  0x34   :  { %p937_p9 = pnand %p936_p8, %p930_p5 }
  0x36   :  { %940 = shalt.err (!%p937_p9)
}
  0x37   :  { %91 = dma.hbm_to_vmem [thread:$0]  %s1418_s5, 384, %s86_s15, [#allocation12], %s1111_s21, %s1111_s21, %s1112_s22  }
  0x38   :  { %s941_s30 = scalar_lea.hbm %s1413_s0, 256 }
  0x39   :  { %p942_p10 = scmp.ne.s32.totalorder %s1413_s0, %s941_s30  ;;  %p945_p11 = scmp.lt.u32.totalorder %s941_s30, %s1413_s0 }
  0x3b   :  { %p947_p12 = pnand %p945_p11, %p942_p10 }
  0x3d   :  { %950 = shalt.err (!%p947_p12)
}
  0x3e   :  { %s951_s14 = scalar_lea.vmem %s1209_s17, 256  ;;  %p956_p0 = scmp.lt.s32.totalorder %s1209_s17, %s1209_s17 }
  0x3f   :  { %p952_p13 = scmp.ne.s32.totalorder %s1209_s17, %s951_s14  ;;  %p957_p1 = scmp.lt.s32.totalorder %s951_s14, %s951_s14 }
  0x41   :  { %p958_p2 = por %p957_p1, %p956_p0 }
  0x43   :  { %p959_p3 = pnand %p958_p2, %p952_p13 }
  0x45   :  { %962 = shalt.err (!%p959_p3)
}
  0x46   :  { %33 = dma.hbm_to_vmem [thread:$0]  %s1413_s0, 256, %s1209_s17, [#allocation3], %s1111_s21, %s1111_s21, %s1112_s22  }
  0x47   :  { %s1115_s16 = smov [#allocation7]   ;;  %s1116_s19 = smov [#allocation10]  }
  0x48   :  { %s52_s18 = sshll.u32 %s1115_s16, 4  ;;  %s73_s20 = sshll.u32 %s1116_s19, 4  ;;  %s53_s18 = int_to_ptr.vmem [resolvable:$true] %s52_s18  ;;  %s1246_s20 = int_to_ptr.vmem [resolvable:$true] %s73_s20 }
  0x49   :  { %s963_s25 = scalar_lea.hbm %s1415_s2, 64 }
  0x4a   :  { %p964_p4 = scmp.ne.s32.totalorder %s1415_s2, %s963_s25  ;;  %p967_p5 = scmp.lt.u32.totalorder %s963_s25, %s1415_s2 }
  0x4c   :  { %p969_p6 = pnand %p967_p5, %p964_p4 }
  0x4e   :  { %972 = shalt.err (!%p969_p6)
}
  0x4f   :  { %s973_s0 = scalar_lea.vmem %s53_s18, 64  ;;  %p978_p8 = scmp.lt.s32.totalorder %s53_s18, %s53_s18 }
  0x50   :  { %p974_p7 = scmp.ne.s32.totalorder %s53_s18, %s973_s0  ;;  %p979_p9 = scmp.lt.s32.totalorder %s973_s0, %s973_s0 }
  0x52   :  { %p980_p10 = por %p979_p9, %p978_p8 }
  0x54   :  { %p981_p11 = pnand %p980_p10, %p974_p7 }
  0x56   :  { %984 = shalt.err (!%p981_p11)
}
  0x57   :  { %55 = dma.hbm_to_vmem [thread:$0]  %s1415_s2, 64, %s53_s18, [#allocation6]  }
  0x58   :  { %s985_s11 = scalar_lea.hbm %s1417_s4, 256 }
  0x59   :  { %p986_p12 = scmp.ne.s32.totalorder %s1417_s4, %s985_s11  ;;  %p989_p13 = scmp.lt.u32.totalorder %s985_s11, %s1417_s4 }
  0x5b   :  { %p991_p0 = pnand %p989_p13, %p986_p12 }
  0x5d   :  { %994 = shalt.err (!%p991_p0)
}
  0x5e   :  { %s995_s5 = scalar_lea.vmem %s1246_s20, 256  ;;  %p1000_p2 = scmp.lt.s32.totalorder %s1246_s20, %s1246_s20 }
  0x5f   :  { %p996_p1 = scmp.ne.s32.totalorder %s1246_s20, %s995_s5  ;;  %p1001_p3 = scmp.lt.s32.totalorder %s995_s5, %s995_s5 }
  0x61   :  { %p1002_p4 = por %p1001_p3, %p1000_p2 }
  0x63   :  { %p1003_p5 = pnand %p1002_p4, %p996_p1 }
  0x65   :  { %1006 = shalt.err (!%p1003_p5)
}
  0x66   :  { %79 = dma.hbm_to_vmem [thread:$0]  %s1417_s4, 256, %s1246_s20, [#allocation9], %s1111_s21, %s1111_s21, %s1112_s22  }
  0x67   :  { %s1117_s16 = smov [#allocation13]   ;;  %s1118_s19 = smov [#allocation14]  }
  0x68   :  { %s98_s18 = sshll.u32 %s1117_s16, 4  ;;  %s107_s23 = sshll.u32 %s1118_s19, 4  ;;  %s99_s18 = int_to_ptr.vmem [resolvable:$true] %s98_s18  ;;  %s1280_s23 = int_to_ptr.vmem [resolvable:$true] %s107_s23 }
  0x69   :  { %s1007_s26 = scalar_lea.hbm %s1419_s6, 64 }
  0x6a   :  { %p1008_p6 = scmp.ne.s32.totalorder %s1419_s6, %s1007_s26  ;;  %p1011_p7 = scmp.lt.u32.totalorder %s1007_s26, %s1419_s6 }
  0x6c   :  { %p1013_p8 = pnand %p1011_p7, %p1008_p6 }
  0x6e   :  { %1016 = shalt.err (!%p1013_p8)
}
  0x6f   :  { %s1017_s4 = scalar_lea.vmem %s99_s18, 64  ;;  %p1022_p10 = scmp.lt.s32.totalorder %s99_s18, %s99_s18 }
  0x70   :  { %p1018_p9 = scmp.ne.s32.totalorder %s99_s18, %s1017_s4  ;;  %p1023_p11 = scmp.lt.s32.totalorder %s1017_s4, %s1017_s4 }
  0x72   :  { %p1024_p12 = por %p1023_p11, %p1022_p10 }
  0x74   :  { %p1025_p13 = pnand %p1024_p12, %p1018_p9 }
  0x76   :  { %1028 = shalt.err (!%p1025_p13)
}
  0x77   :  { %101 = dma.hbm_to_vmem [thread:$0]  %s1419_s6, 64, %s99_s18, [#allocation12]  }
  0x78   :  { %s1029_s30 = scalar_lea.hbm %s1420_s7, 2048 }
  0x79   :  { %p1030_p0 = scmp.ne.s32.totalorder %s1420_s7, %s1029_s30  ;;  %p1033_p1 = scmp.lt.u32.totalorder %s1029_s30, %s1420_s7 }
  0x7b   :  { %p1035_p2 = pnand %p1033_p1, %p1030_p0 }
  0x7d   :  { %1038 = shalt.err (!%p1035_p2)
}
  0x7e   :  { %s1039_s14 = scalar_lea.vmem %s1280_s23, 2048  ;;  %p1044_p4 = scmp.lt.s32.totalorder %s1280_s23, %s1280_s23 }
  0x7f   :  { %p1040_p3 = scmp.ne.s32.totalorder %s1280_s23, %s1039_s14  ;;  %p1045_p5 = scmp.lt.s32.totalorder %s1039_s14, %s1039_s14 }
  0x81   :  { %p1046_p6 = por %p1045_p5, %p1044_p4 }
  0x83   :  { %p1047_p7 = pnand %p1046_p6, %p1040_p3 }
  0x85   :  { %1050 = shalt.err (!%p1047_p7)
}
  0x86   :  { %113 = dma.hbm_to_vmem [thread:$0]  %s1420_s7, 2048, %s1280_s23, [#allocation15], %s1111_s21, %s1111_s21, %s1112_s22  }
  0x87   :  { %1095 = dma.done.wait [#allocation3], 256  }
  0x88   :  { %1096 = vsyncadd [#allocation3], 4294967040 }
  0x89   :  { %1097 = dma.done.wait [#allocation6], 320  }
  0x8a   :  { %1098 = vsyncadd [#allocation6], 4294966976 }
  0x8b   :  { %1099 = dma.done.wait [#allocation9], 2304  }
  0x8c   :  { %1100 = vsyncadd [#allocation9], 4294964992 }
  0x8d   :  { %1101 = dma.done.wait [#allocation12], 448  }
  0x8e   :  { %1102 = vsyncadd [#allocation12], 4294966848 }
  0x8f   :  { %1103 = dma.done.wait [#allocation15], 2048  }
  0x90   :  { %1104 = vsyncadd [#allocation15], 4294965248  ;;  %vm170_vm0 = vcmask 1043456   ;;  %vm1119_vm1 = vmmov 1   ;;  %vm163_vm3 = vcmask 97280   ;;  %v140_v0 = vld [vmem:[#allocation5] sm:$0xff]  ;;  %v159_v11 = vlaneseq }
  0x91   :  { %vm781_vm2 = vmpackc.low %vm170_vm0, %vm1119_vm1  ;;  %v141_v1 = vld [vmem:[#allocation5 + $0x8] sm:$0xf]  ;;  %vm400_vm4 = vcmask 195584   ;;  %v377_v4 = vld [vmem:[#allocation11 + $0x8] sm:$0xff]  ;;  %s1120_s7 = smov [#allocation16]   ;;  %s1121_s15 = smov [#allocation17]  }
  0x92   :  { %v376_v2 = vld [vmem:[#allocation11] sm:$0xff]  ;;  %v780_v3 = vpack.c.bf16 %v141_v1, %v140_v0  ;;  %v138_v5 = vld [vmem:[#allocation2] sm:$0xff]  ;;  %v139_v9 = vld [vmem:[#allocation2 + $0x8] sm:$0xff]  ;;  %v1318_v12 = vshrl.u32 %v159_v11, 7  ;;  %s612_s2 = sshll.u32 %s1120_s7, 4  ;;  %s624_s16 = sshll.u32 %s1121_s15, 4  ;;  %s613_s2 = int_to_ptr.vmem [resolvable:$true] %s612_s2  ;;  %s1376_s16 = int_to_ptr.vmem [resolvable:$true] %s624_s16 }
  0x93   :  { %v818_v6 = vpack.c.bf16 %v377_v4, %v376_v2  ;;  %698 = vmatprep.mubr.msk.f32.mxu1 %vm163_vm3, %v138_v5  ;;  %v374_v7 = vld [vmem:[#allocation10] sm:$0xff]  ;;  %v375_v10 = vld [vmem:[#allocation10 + $0x8] sm:$0xff]  ;;  %v1321_v14 = vld [vmem:[#allocation7] sm:$0xf]  ;;  %s1051_s18 = scalar_lea.vmem %s613_s2, 256  ;;  %p1056_p9 = scmp.lt.s32.totalorder %s613_s2, %s613_s2 }
  0x94   :  { %782 = vmatprep.subr.msk.bf16.mxu1 %vm781_vm2, %v780_v3  ;;  %v378_v8 = vld [vmem:[#allocation11 + $0x10] sm:$0xff]  ;;  %742 = vmatprep.mubr.msk.f32.mxu0 %vm400_vm4, %v374_v7  ;;  %v161_v13 = vsub.s32 0, %v1318_v12  ;;  %v1324_v16 = vld [vmem:[#allocation13] sm:$0xf]  ;;  %v145_v45 = vld [vmem:[#allocation8 + $0x10] sm:$0xff]  ;;  %p1052_p8 = scmp.ne.s32.totalorder %s613_s2, %s1051_s18  ;;  %p1057_p10 = scmp.lt.s32.totalorder %s1051_s18, %s1051_s18 }
  0x95   :  { %785 = vmatpush3.bf16.msk.msra.mxu1 %vm781_vm2, %v780_v3  ;;  %819 = vmatprep.subr.bf16.mxu0 %v818_v6  ;;  %v143_v26 = vld [vmem:[#allocation8] sm:$0xff]  ;;  %v144_v27 = vld [vmem:[#allocation8 + $0x8] sm:$0xff]  ;;  %v146_v46 = vld [vmem:[#allocation8 + $0x18] sm:$0xff] }
  0x96   :  { %821 = vmatpush3.bf16.msra.mxu0 %v818_v6  ;;  %v162_v15 = vrot.slane %v1321_v14, %v161_v13  ;;  %v399_v18 = vrot.slane %v1324_v16, %v161_v13  ;;  %v786_v28 = vpack.c.bf16 %v144_v27, %v143_v26  ;;  %v380_v47 = vld [vmem:[#allocation14] sm:$0xff]  ;;  %v790_v48 = vpack.c.bf16 %v146_v46, %v145_v45  ;;  %v381_v49 = vld [vmem:[#allocation14 + $0x8] sm:$0xff]  ;;  %v147_v51 = vld [vmem:[#allocation8 + $0x20] sm:$0xff]  ;;  %p1058_p11 = por %p1057_p10, %p1056_p9 }
  0x97   :  { %740 = vmatprep.subr.mxu0 %v378_v8  ;;  %v822_v50 = vpack.c.bf16 %v381_v49, %v380_v47  ;;  %v148_v52 = vld [vmem:[#allocation8 + $0x28] sm:$0xff]  ;;  %v382_v53 = vld [vmem:[#allocation14 + $0x10] sm:$0xff]  ;;  %v149_v57 = vld [vmem:[#allocation8 + $0x30] sm:$0xff] }
  0x98   :  { %699 = vmatmul.mubr.msk.f32.vlgmr.msra.gmra.mrb[0].mxu1 %vm163_vm3, %v139_v9  ;;  %787 = vmatprep.subr.bf16.mxu1 %v786_v28  ;;  %v794_v54 = vpack.c.bf16 %v148_v52, %v147_v51  ;;  %v383_v55 = vld [vmem:[#allocation14 + $0x18] sm:$0xff]  ;;  %v150_v58 = vld [vmem:[#allocation8 + $0x38] sm:$0xff]  ;;  %v384_v59 = vld [vmem:[#allocation14 + $0x20] sm:$0xff]  ;;  %p1059_p12 = pnand %p1058_p11, %p1052_p8 }
  0x99   :  { %789 = vmatpush3.bf16.msra.mxu1 %v786_v28  ;;  %v826_v56 = vpack.c.bf16 %v383_v55, %v382_v53  ;;  %v798_v60 = vpack.c.bf16 %v150_v58, %v149_v57  ;;  %v385_v61 = vld [vmem:[#allocation14 + $0x28] sm:$0xff]  ;;  %v151_v63 = vld [vmem:[#allocation8 + $0x40] sm:$0xff]  ;;  %v152_v0 = vld [vmem:[#allocation8 + $0x48] sm:$0xff] }
  0x9a   :  { %741 = vmatpush3.msra.mxu0 %v378_v8  ;;  %791 = vmatprep.subr.bf16.mxu1 %v790_v48  ;;  %v830_v62 = vpack.c.bf16 %v385_v61, %v384_v59  ;;  %v386_v1 = vld [vmem:[#allocation14 + $0x30] sm:$0xff]  ;;  %v802_v2 = vpack.c.bf16 %v152_v0, %v151_v63  ;;  %v387_v3 = vld [vmem:[#allocation14 + $0x38] sm:$0xff]  ;;  %v153_v5 = vld [vmem:[#allocation8 + $0x50] sm:$0xff] }
  0x9b   :  { %743 = vmatmul.mubr.msk.f32.vlgmr.msra.gmra.mrb[0].mxu0 %vm400_vm4, %v375_v10  ;;  %823 = vmatprep.subr.bf16.mxu0 %v822_v50  ;;  %v834_v4 = vpack.c.bf16 %v387_v3, %v386_v1  ;;  %v154_v6 = vld [vmem:[#allocation8 + $0x58] sm:$0xff]  ;;  %v388_v7 = vld [vmem:[#allocation14 + $0x40] sm:$0xff]  ;;  %v155_v10 = vld [vmem:[#allocation8 + $0x60] sm:$0xff] }
  0x9c   :  { %825 = vmatpush3.bf16.msra.mxu0 %v822_v50  ;;  %v806_v8 = vpack.c.bf16 %v154_v6, %v153_v5  ;;  %v389_v9 = vld [vmem:[#allocation14 + $0x48] sm:$0xff]  ;;  %v156_v11 = vld [vmem:[#allocation8 + $0x68] sm:$0xff]  ;;  %v394_v26 = vld [vmem:[#allocation14 + $0x70] sm:$0xff] }
  0x9d   :  { %793 = vmatpush3.bf16.msra.mxu1 %v790_v48  ;;  %827 = vmatprep.subr.bf16.mxu0 %v826_v56  ;;  %v838_v13 = vpack.c.bf16 %v389_v9, %v388_v7  ;;  %v395_v27 = vld [vmem:[#allocation14 + $0x78] sm:$0xff] }
  0x9e   :  { %795 = vmatprep.subr.bf16.mxu1 %v794_v54  ;;  %v850_v28 = vpack.c.bf16 %v395_v27, %v394_v26 }
  0xa0   :  { %829 = vmatpush3.bf16.msra.mxu0 %v826_v56 }
  0xa1   :  { %797 = vmatpush3.bf16.msra.mxu1 %v794_v54  ;;  %831 = vmatprep.subr.bf16.mxu0 %v830_v62 }
  0xa2   :  { %799 = vmatprep.subr.bf16.mxu1 %v798_v60 }
  0xa4   :  { %833 = vmatpush3.bf16.msra.mxu0 %v830_v62  ;;  %v287_v62 = vsub.s32 2, %v1318_v12 }
  0xa5   :  { %801 = vmatpush3.bf16.msra.mxu1 %v798_v60  ;;  %835 = vmatprep.subr.bf16.mxu0 %v834_v4  ;;  %v281_v60 = vsub.s32 1, %v1318_v12 }
  0xa6   :  { %803 = vmatprep.subr.bf16.mxu1 %v802_v2  ;;  %v521_v9 = vrot.slane %v1324_v16, %v287_v62 }
  0xa7   :  { %v282_v63 = vrot.slane %v1321_v14, %v281_v60 }
  0xa8   :  { %837 = vmatpush3.bf16.msra.mxu0 %v834_v4  ;;  %v515_v4 = vrot.slane %v1324_v16, %v281_v60 }
  0xa9   :  { %805 = vmatpush3.bf16.msra.mxu1 %v802_v2  ;;  %839 = vmatprep.subr.bf16.mxu0 %v838_v13  ;;  %v288_v2 = vrot.slane %v1321_v14, %v287_v62 }
  0xaa   :  { %807 = vmatprep.subr.bf16.mxu1 %v806_v8 }
  0xac   :  { %841 = vmatpush3.bf16.msra.mxu0 %v838_v13 }
  0xad   :  { %809 = vmatpush3.bf16.msra.mxu1 %v806_v8 }
 0x16b   :  { %v700_v17 = vpop.f32.mrb[0].mxu1 }
 0x16c   :  { %v246_v19 = vadd.f32 %v700_v17, %v162_v15  ;;  %v240_v20 = vpop.f32.mrb[1].mxu1  ;;  %v390_v17 = vld [vmem:[#allocation14 + $0x50] sm:$0xff] }
 0x16d   :  { %v241_v21 = vadd.f32 %v240_v20, %v162_v15  ;;  %v810_v15 = vpack.c.bf16 %v156_v11, %v155_v10  ;;  %v157_v20 = vld [vmem:[#allocation8 + $0x70] sm:$0xff] }
 0x16e   :  { %v744_v22 = vpop.f32.mrb[0].mxu0  ;;  %251 = vadd.xlane.f32.xlu1 %v246_v19 }
 0x16f   :  { %v479_v23 = vadd.f32 %v744_v22, %v399_v18  ;;  %v473_v24 = vpop.f32.mrb[1].mxu0  ;;  %249 = vadd.xlane.f32.xlu0 %v241_v21  ;;  %811 = vmatprep.subr.bf16.mxu1 %v810_v15 }
 0x170   :  { %v474_v25 = vadd.f32 %v473_v24, %v399_v18  ;;  %v391_v18 = vld [vmem:[#allocation14 + $0x58] sm:$0xff]  ;;  %813 = vmatpush3.bf16.msra.mxu1 %v810_v15  ;;  %v393_v24 = vld [vmem:[#allocation14 + $0x68] sm:$0xff] }
 0x172   :  { %484 = vadd.xlane.f32.xlu1 %v479_v23 }
 0x173   :  { %482 = vadd.xlane.f32.xlu0 %v474_v25 }
 0x1fb   :  { %v252_v29 = vpop.xlane.xlu1 %251 }
 0x1fc   :  { %v250_v30 = vpop.xlane.xlu0 %249  ;;  %v1327_v31 = vmul.f32 0.03125, %v252_v29 }
 0x1fd   :  { %v1329_v32 = vmul.f32 0.03125, %v250_v30 }
 0x1fe   :  { %v1335_v36 = vsub.f32 %v246_v19, %v1327_v31  ;;  %v842_v19 = vpack.c.bf16 %v391_v18, %v390_v17  ;;  %v264_v30 = vmul.f32 %v1327_v31, %v1327_v31 }
 0x1ff   :  { %v1332_v33 = vsub.f32 %v241_v21, %v1329_v32  ;;  %v485_v34 = vpop.xlane.xlu1 %484  ;;  %v158_v21 = vld [vmem:[#allocation8 + $0x78] sm:$0xff]  ;;  %v263_v29 = vmul.f32 %v1329_v32, %v1329_v32 }
 0x200   :  { %v483_v35 = vpop.xlane.xlu0 %482  ;;  %v1337_v37 = vmul.f32 0.03125, %v485_v34  ;;  %v258_v42 = vmul.f32 %v1335_v36, %v1335_v36  ;;  %v814_v22 = vpack.c.bf16 %v158_v21, %v157_v20  ;;  %843 = vmatprep.subr.bf16.mxu0 %v842_v19  ;;  %v266_v46 = vmul.f32 96.0, %v264_v30 }
 0x201   :  { %v1339_v38 = vmul.f32 0.03125, %v483_v35  ;;  %v257_v39 = vmul.f32 %v1332_v33, %v1332_v33  ;;  %845 = vmatpush3.bf16.msra.mxu0 %v842_v19  ;;  %v265_v35 = vmul.f32 96.0, %v263_v29 }
 0x202   :  { %v1347_v41 = vsub.f32 %v479_v23, %v1337_v37  ;;  %v392_v23 = vld [vmem:[#allocation14 + $0x60] sm:$0xff]  ;;  %815 = vmatprep.subr.bf16.mxu1 %v814_v22 }
 0x203   :  { %v1344_v40 = vsub.f32 %v474_v25, %v1339_v38  ;;  %259 = vadd.xlane.f32.xlu0 %v257_v39  ;;  %v846_v25 = vpack.c.bf16 %v393_v24, %v392_v23  ;;  %817 = vmatpush3.bf16.msra.mxu1 %v814_v22  ;;  %v496_v34 = vmul.f32 %v1339_v38, %v1339_v38  ;;  %v295_v24 = vsub.s32 3, %v1318_v12 }
 0x204   :  { %v491_v44 = vmul.f32 %v1347_v41, %v1347_v41 }
 0x205   :  { %v490_v43 = vmul.f32 %v1344_v40, %v1344_v40  ;;  %847 = vmatprep.subr.bf16.mxu0 %v846_v25  ;;  %v498_v45 = vmul.f32 96.0, %v496_v34  ;;  %v529_v26 = vrot.slane %v1324_v16, %v295_v24 }
 0x206   :  { %849 = vmatpush3.bf16.msra.mxu0 %v846_v25 }
 0x207   :  { %261 = vadd.xlane.f32.xlu0 %v258_v42  ;;  %492 = vadd.xlane.f32.xlu1 %v490_v43  ;;  %v497_v43 = vmul.f32 %v1337_v37, %v1337_v37 }
 0x208   :  { %851 = vmatprep.subr.bf16.mxu0 %v850_v28 }
 0x209   :  { %v499_v53 = vmul.f32 96.0, %v497_v43 }
 0x20a   :  { %853 = vmatpush3.bf16.msra.mxu0 %v850_v28 }
 0x20b   :  { %494 = vadd.xlane.f32.xlu1 %v491_v44 }
 0x290   :  { %v260_v39 = vpop.xlane.xlu0 %259 }
 0x291   :  { %v267_v42 = vsub.f32 %v260_v39, %v265_v35 }
 0x293   :  { %v269_v44 = vmul.f32 0.03125, %v267_v42 }
 0x294   :  { %v493_v47 = vpop.xlane.xlu1 %492  ;;  %v262_v48 = vpop.xlane.xlu0 %261 }
 0x295   :  { %v271_v49 = vmax.f32 %v269_v44, 0.0  ;;  %v500_v50 = vsub.f32 %v493_v47, %v498_v45  ;;  %v268_v32 = vsub.f32 %v262_v48, %v266_v46 }
 0x297   :  { %v273_v51 = vadd.f32 1e-05, %v271_v49  ;;  %v502_v52 = vmul.f32 0.03125, %v500_v50  ;;  %v270_v31 = vmul.f32 0.03125, %v268_v32 }
 0x298   :  { %v495_v54 = vpop.xlane.xlu1 %494 }
 0x299   :  { %867 = vrsqrt.f32 %v273_v51  ;;  %v504_v38 = vmax.f32 %v502_v52, 0.0  ;;  %v272_v55 = vmax.f32 %v270_v31, 0.0  ;;  %v501_v56 = vsub.f32 %v495_v54, %v499_v53 }
 0x29b   :  { %v506_v57 = vadd.f32 1e-05, %v504_v38  ;;  %v274_v58 = vadd.f32 1e-05, %v272_v55  ;;  %v503_v37 = vmul.f32 0.03125, %v501_v56 }
 0x29d   :  { %869 = vrsqrt.f32 %v506_v57  ;;  %v505_v59 = vmax.f32 %v503_v37, 0.0 }
 0x29e   :  { %871 = vrsqrt.f32 %v274_v58 }
 0x29f   :  { %v507_v61 = vadd.f32 1e-05, %v505_v59 }
 0x2a1   :  { %873 = vrsqrt.f32 %v507_v61 }
 0x2a3   :  { %v868_v0 = vpop.eup %867 }
 0x2a4   :  { %v277_v1 = vmul.f32 %v868_v0, %v1332_v33 }
 0x2a6   :  { %v283_v3 = vmul.f32 %v282_v63, %v277_v1 }
 0x2a7   :  { %v870_v5 = vpop.eup %869 }
 0x2a8   :  { %v872_v6 = vpop.eup %871  ;;  %v289_v7 = vadd.f32 %v288_v2, %v283_v3  ;;  %v510_v8 = vmul.f32 %v870_v5, %v1344_v40 }
 0x2a9   :  { %v278_v10 = vmul.f32 %v872_v6, %v1335_v36  ;;  %v296_v36 = vrot.slane %v1321_v14, %v295_v24 }
 0x2aa   :  { %v291_v11 = vmax.f32 %v289_v7, 0.0  ;;  %v516_v13 = vmul.f32 %v515_v4, %v510_v8 }
 0x2ab   :  { %v874_v15 = vpop.eup %873  ;;  %v284_v17 = vmul.f32 %v282_v63, %v278_v10 }
 0x2ac   :  { %733 = vmatprep.mubr.f32.mxu1 %v291_v11  ;;  %v522_v33 = vadd.f32 %v521_v9, %v516_v13  ;;  %v511_v18 = vmul.f32 %v874_v15, %v1347_v41 }
 0x2ad   :  { %v290_v19 = vadd.f32 %v288_v2, %v284_v17 }
 0x2ae   :  { %v524_v20 = vmax.f32 %v522_v33, 0.0  ;;  %v517_v21 = vmul.f32 %v515_v4, %v511_v18 }
 0x2af   :  { %v292_v22 = vmax.f32 %v290_v19, 0.0 }
 0x2b0   :  { %777 = vmatprep.mubr.f32.mxu0 %v524_v20  ;;  %v523_v23 = vadd.f32 %v521_v9, %v517_v21 }
 0x2b1   :  { %734 = vmatmul.mubr.f32.vlgmr.msra.gmra.mrb[2].mxu1 %v292_v22 }
 0x2b2   :  { %v525_v40 = vmax.f32 %v523_v23, 0.0 }
 0x2b4   :  { %778 = vmatmul.mubr.f32.vlgmr.msra.gmra.mrb[2].mxu0 %v525_v40 }
 0x384   :  { %v735_v25 = vpop.f32.mrb[2].mxu1 }
 0x385   :  { %v369_v27 = vadd.f32 %v735_v25, %v296_v36  ;;  %v363_v41 = vpop.f32.mrb[3].mxu1 }
 0x386   :  { %v364_v28 = vadd.f32 %v363_v41, %v296_v36 }
 0x387   :  { %373 = vst [vmem:[#allocation16 + $0x8] sm:$0xff] %v369_v27  ;;  %v779_v29 = vpop.f32.mrb[2].mxu0 }
 0x388   :  { %372 = vst [vmem:[#allocation16] sm:$0xff] %v364_v28  ;;  %v602_v30 = vadd.f32 %v779_v29, %v529_v26  ;;  %v596_v34 = vpop.f32.mrb[3].mxu0 }
 0x389   :  { %v597_v12 = vadd.f32 %v596_v34, %v529_v26 }
 0x38a   :  { %1062 = shalt.err (!%p1059_p12)
}
 0x38b   :  { %s1063_s24 = scalar_lea.hbm %s1421_s8, 256 }
 0x38c   :  { %p1064_p13 = scmp.ne.s32.totalorder %s1421_s8, %s1063_s24  ;;  %p1067_p0 = scmp.lt.u32.totalorder %s1063_s24, %s1421_s8 }
 0x38e   :  { %p1069_p1 = pnand %p1067_p0, %p1064_p13 }
 0x390   :  { %1072 = shalt.err (!%p1069_p1)
}
 0x391   :  { %618 = dma.vmem_to_hbm [thread:$0]  %s613_s2, 256, %s1421_s8, [#allocation4], %s1111_s21, %s1111_s21, %s1112_s22   ;;  %606 = vst [vmem:[#allocation17 + $0x8] sm:$0xff] %v602_v30  ;;  %605 = vst [vmem:[#allocation17] sm:$0xff] %v597_v12 }
 0x392   :  { %s1073_s4 = scalar_lea.vmem %s1376_s16, 256  ;;  %p1078_p3 = scmp.lt.s32.totalorder %s1376_s16, %s1376_s16 }
 0x393   :  { %p1074_p2 = scmp.ne.s32.totalorder %s1376_s16, %s1073_s4  ;;  %p1079_p4 = scmp.lt.s32.totalorder %s1073_s4, %s1073_s4 }
 0x395   :  { %p1080_p5 = por %p1079_p4, %p1078_p3 }
 0x397   :  { %p1081_p6 = pnand %p1080_p5, %p1074_p2 }
 0x399   :  { %1084 = shalt.err (!%p1081_p6)
}
 0x39a   :  { %s1085_s28 = scalar_lea.hbm %s1422_s9, 256 }
 0x39b   :  { %p1086_p7 = scmp.ne.s32.totalorder %s1422_s9, %s1085_s28  ;;  %p1089_p8 = scmp.lt.u32.totalorder %s1085_s28, %s1422_s9 }
 0x39d   :  { %p1091_p9 = pnand %p1089_p8, %p1086_p7 }
 0x39f   :  { %1094 = shalt.err (!%p1091_p9)
}
 0x3a0   :  { %630 = dma.vmem_to_hbm [thread:$0]  %s1376_s16, 256, %s1422_s9, [#allocation18], %s1111_s21, %s1111_s21, %s1112_s22  }
 0x3a1   :  { %1105 = dma.done.wait [#allocation4], 256  }
 0x3a2   :  { %1106 = vsyncadd [#allocation4], 4294967040 }
 0x3a3   :  { %1107 = dma.done.wait [#allocation18], 256  }
 0x3a4   :  { %1108 = vsyncadd [#allocation18], 4294967040 }
 0x3a5   :  { %637 = vsyncpa [#allocation3], 1 }
 0x3a6   :  { %638 = vsyncpa [#allocation6], 1 }
 0x3a7   :  { %639 = vsyncpa [#allocation9], 1 }
 0x3a8   :  { %640 = vsyncpa [#allocation12], 1 }
 0x3a9   :  { %641 = vsyncpa [#allocation15], 1 }
 0x3aa   :  { %642 = vsyncpa [#allocation4], 1 }
 0x3ab   :  { %643 = vsyncpa [#allocation18], 1 }

</bundles_post_ra>
